<compile_context>
chip_gen: v7x
topology: tpu7x:2x2x1
jax: 0.10.0
libtpu: 0.0.40
codegen_flags: <defaults>
</compile_context>

<pallas_src>
import math

import jax
import jax.numpy as jnp
from jax import lax
from jax.experimental import pallas as pl
from jax.experimental.pallas import tpu as pltpu

# ------------------------- configuration (from the module) -------------------
VEH_X = 8          # obs_shape['veh_x']
VEH_HIDDEN = 16    # configs['veh_hidden']
ACT_HIDDEN = 64    # configs['act_hidden']
OUT_DIM = 1        # critic value
MAX_TM = 2048      # max batch tile on the lane axis (multiple of 128)


def _round_up(x, m):
    return ((x + m - 1) // m) * m


# ------------------------------- Pallas kernel -------------------------------
def mlp_critic_kernel(idx_ref, t01_ref, w2_ref, b2_ref, w3_ref, b3_ref, o_ref):
    """Critic forward for one TM-wide tile of receivers (batch on lanes).

    t01_ref : [V, 64]  per-vehicle pre-activation of the fused first layer
    w2_ref  : [64, 64] critic_linear[2] weight (in, out)
    b2_ref  : [1, 64]  critic_linear[2] bias
    w3_ref  : [1, 64]  critic_linear[4] weight row
    b3_ref  : [1]      critic_linear[4] bias (SMEM scalar)
    idx_ref : [1, TM]  receiver -> vehicle indices (int32)
    o_ref   : [1, TM]  critic values
    """
    num_veh = t01_ref.shape[0]
    idx = idx_ref[...]                       # [1, TM]
    tm = idx.shape[1]

    # --- per-vehicle critic values (hoisted out of the receiver axis) -------
    # The network's output depends only on the gathered vehicle row, so it is
    # exact to evaluate it once over the V-row fleet table and merely gather.
    h = jnp.tanh(t01_ref[...])                                          # [V, 64]
    h = jnp.tanh(jnp.dot(h, w2_ref[...],
                         preferred_element_type=jnp.float32) + b2_ref[...])  # [V, 64]
    # Final Linear(64 -> 1) as lane-mul + lane-reduce (VPU/XLU, avoids an
    # N=1 MXU matmul).
    vals = jnp.sum(h * w3_ref[...], axis=1, keepdims=True) + b3_ref[0]  # [V, 1]

    # --- per-receiver gather: out[0, j] = vals[idx[0, j]] --------------------
    # One-hot select over vehicles + sublane reduce.  Contract: indices must
    # lie in [0, V); an out-of-range index yields 0.0 instead of raising.
    veh_iota = lax.broadcasted_iota(jnp.int32, (num_veh, tm), 0)        # [V, TM]
    sel = jnp.where(veh_iota == idx, vals, 0.0)                         # [V, TM]
    o_ref[...] = jnp.sum(sel, axis=0, keepdims=True).astype(o_ref.dtype)  # [1, TM]


# --------------------------------- wrapper ------------------------------------
def mlp_critic_forward(vehicles_x, receiver_idx, params, *, max_tm=MAX_TM):
    """Gather + 3-layer critic MLP, fully inside one tiled Pallas call."""
    w0, b0, w1, b1, w2, b2, w3, b3 = params
    n = receiver_idx.shape[0]
    num_veh = vehicles_x.shape[0]

    # Exact fusion of Linear(8->16) and Linear(16->64) (no activation between)
    # and of the fused layer with the fleet table: table01 = X @ W01 + b01.
    w01 = w0 @ w1                                                   # [8, 64]
    b01 = b0 @ w1 + b1                                              # [1, 64]
    table01 = (jnp.asarray(vehicles_x, jnp.float32) @ w01 + b01)    # [V, 64]

    w2_f = jnp.asarray(w2, jnp.float32)                             # [64, 64]
    b2_f = jnp.asarray(b2, jnp.float32).reshape(1, ACT_HIDDEN)      # [1, 64]
    w3_row = jnp.asarray(w3, jnp.float32).T                         # [1, 64]
    b3_s = jnp.asarray(b3, jnp.float32).reshape((1,))               # [1] (SMEM)

    # Adaptive lane tile: amortize per-step overhead at large N, clamp at
    # small N, keep >= 2 grid steps when possible (v7x has 2 TensorCores).
    n128 = _round_up(max(n, 1), 128)
    if n128 <= 128:
        tm = 128
    else:
        tm = min(max_tm, _round_up(n128 // 2, 128))
    n_pad = _round_up(n128, tm)

    # Pad the receiver index list with index 0 (valid); padded outputs are
    # sliced away below.
    idx = jnp.zeros((1, n_pad), jnp.int32).at[0, :n].set(
        receiver_idx.astype(jnp.int32))

    grid = (n_pad // tm,)
    resident = lambda shape: pl.BlockSpec(shape, lambda i: (0, 0))

    out = pl.pallas_call(
        mlp_critic_kernel,
        out_shape=jax.ShapeDtypeStruct((1, n_pad), jnp.float32),
        grid=grid,
        in_specs=[
            pl.BlockSpec((1, tm), lambda i: (0, i)),           # receiver indices
            resident((num_veh, ACT_HIDDEN)),                   # table01 (resident)
            resident((ACT_HIDDEN, ACT_HIDDEN)),                # W2
            resident((1, ACT_HIDDEN)),                         # b2
            resident((1, ACT_HIDDEN)),                         # W3 row
            pl.BlockSpec(memory_space=pltpu.MemorySpace.SMEM), # b3 scalar
        ],
        out_specs=pl.BlockSpec((1, tm), lambda i: (0, i)),
        compiler_params=pltpu.CompilerParams(
            dimension_semantics=("parallel",)),                # shard batch across TCs
    )(idx, table01, w2_f, b2_f, w3_row, b3_s)

    # Back to the PyTorch output shape [N, 1].
    return out[0, :n].reshape(n, 1)


# --------------------------- deterministic parameters ------------------------
def init_params(key):
    """Orthogonal weights (gain sqrt(2)), zero biases — as in init_()."""
    gain = math.sqrt(2.0)
    orth = jax.nn.initializers.orthogonal(scale=gain)
    k0, k1, k2, k3 = jax.random.split(key, 4)
    # PyTorch Linear stores W as (out, in) and computes x @ W.T + b.
    # We store the already-transposed (in, out) matrices.
    w0 = orth(k0, (VEH_HIDDEN, VEH_X), jnp.float32).T       # (8, 16)
    w1 = orth(k1, (ACT_HIDDEN, VEH_HIDDEN), jnp.float32).T  # (16, 64)
    w2 = orth(k2, (ACT_HIDDEN, ACT_HIDDEN), jnp.float32).T  # (64, 64)
    w3 = orth(k3, (OUT_DIM, ACT_HIDDEN), jnp.float32).T     # (64, 1)
    b0 = jnp.zeros((1, VEH_HIDDEN), jnp.float32)
    b1 = jnp.zeros((1, ACT_HIDDEN), jnp.float32)
    b2 = jnp.zeros((1, ACT_HIDDEN), jnp.float32)
    b3 = jnp.zeros((1, OUT_DIM), jnp.float32)
    return (w0, b0, w1, b1, w2, b2, w3, b3)


# ----------------------------------- demo ------------------------------------
if __name__ == "__main__":
    key = jax.random.PRNGKey(0)
    k_param, k_veh, k_idx = jax.random.split(key, 3)

    num_vehicles = 16   # small synthetic fleet
    num_edges = 8       # number of req2veh receiver indices (batch of the MLP)

    params = init_params(k_param)
    vehicles_x = jax.random.normal(k_veh, (num_vehicles, VEH_X), jnp.float32)
    receiver_idx = jax.random.randint(k_idx, (num_edges,), 0, num_vehicles,
                                      dtype=jnp.int32)

    out = mlp_critic_forward(vehicles_x, receiver_idx, params)
    out = jax.block_until_ready(out)

    # Pure-JAX reference check of the unfused forward pass.
    w0, b0, w1, b1, w2, b2, w3, b3 = params
    xg = jnp.take(vehicles_x, receiver_idx, axis=0)
    h = xg @ w0 + b0
    h = jnp.tanh(h @ w1 + b1)
    h = jnp.tanh(h @ w2 + b2)
    ref = h @ w3 + b3                                    # [N, 1]

    assert out.shape == (num_edges, 1)
    assert jnp.allclose(out, ref, atol=1e-4, rtol=1e-4)

    print("KERNEL_OK")
</pallas_src>

<mosaic_0001>
module attributes {stable_mosaic.version = 11 : i64} {
  func.func @mlp_critic_kernel(%arg0: i32, %arg1: memref<1x128xi32, #tpu.memory_space<vmem>>, %arg2: memref<16x64xf32, #tpu.memory_space<vmem>>, %arg3: memref<64x64xf32, #tpu.memory_space<vmem>>, %arg4: memref<1x64xf32, #tpu.memory_space<vmem>>, %arg5: memref<1x64xf32, #tpu.memory_space<vmem>>, %arg6: memref<1xf32, #tpu.memory_space<smem>>, %arg7: memref<1x128xf32, #tpu.memory_space<vmem>>) attributes {dimension_semantics = [#tpu.dimension_semantics<parallel>], iteration_bounds = array<i64: 1>, scalar_prefetch = 0 : i64, scratch_operands = 0 : i64, tpu.core_type = #tpu.core_type<tc>, window_params = [{transform_indices = @transform_0, window_bounds = array<i64: 1, 128>}, {pipeline_mode = #tpu.pipeline_mode<synchronous>, transform_indices = @transform_1, window_bounds = array<i64: 16, 64>}, {pipeline_mode = #tpu.pipeline_mode<synchronous>, transform_indices = @transform_2, window_bounds = array<i64: 64, 64>}, {pipeline_mode = #tpu.pipeline_mode<synchronous>, transform_indices = @transform_3, window_bounds = array<i64: 1, 64>}, {pipeline_mode = #tpu.pipeline_mode<synchronous>, transform_indices = @transform_4, window_bounds = array<i64: 1, 64>}, {transform_indices = @transform_5, window_bounds = array<i64: 1>}, {transform_indices = @transform_6, window_bounds = array<i64: 1, 128>}]} {
    %c0 = arith.constant 0 : index
    %c0_0 = arith.constant 0 : index
    %0 = vector.load %arg1[%c0, %c0_0] : memref<1x128xi32, #tpu.memory_space<vmem>>, vector<1x128xi32>
    %c0_1 = arith.constant 0 : index
    %c0_2 = arith.constant 0 : index
    %1 = vector.load %arg2[%c0_1, %c0_2] : memref<16x64xf32, #tpu.memory_space<vmem>>, vector<16x64xf32>
    %2 = math.tanh %1 : vector<16x64xf32>
    %c0_3 = arith.constant 0 : index
    %c0_4 = arith.constant 0 : index
    %3 = vector.load %arg3[%c0_3, %c0_4] : memref<64x64xf32, #tpu.memory_space<vmem>>, vector<64x64xf32>
    %cst = arith.constant dense<0.000000e+00> : vector<16x64xf32>
    %4 = tpu.matmul %2, %3, %cst {dimension_numbers = #tpu.dot_dimension_numbers<[1], [0], [0], [1], [0, 0, 1, 1], [], []>} : vector<16x64xf32>, vector<64x64xf32>, vector<16x64xf32> -> vector<16x64xf32>
    %c0_5 = arith.constant 0 : index
    %c0_6 = arith.constant 0 : index
    %5 = vector.load %arg4[%c0_5, %c0_6] : memref<1x64xf32, #tpu.memory_space<vmem>>, vector<1x64xf32>
    %6 = vector.broadcast %5 : vector<1x64xf32> to vector<16x64xf32>
    %7 = arith.addf %4, %6 : vector<16x64xf32>
    %8 = math.tanh %7 : vector<16x64xf32>
    %c0_7 = arith.constant 0 : index
    %c0_8 = arith.constant 0 : index
    %9 = vector.load %arg5[%c0_7, %c0_8] : memref<1x64xf32, #tpu.memory_space<vmem>>, vector<1x64xf32>
    %10 = vector.broadcast %9 : vector<1x64xf32> to vector<16x64xf32>
    %11 = arith.mulf %8, %10 : vector<16x64xf32>
    %cst_9 = arith.constant dense<0.000000e+00> : vector<16xf32>
    %12 = vector.multi_reduction <add>, %11, %cst_9 [1] : vector<16x64xf32> to vector<16xf32>
    %13 = vector.shape_cast %12 : vector<16xf32> to vector<16x1xf32>
    %c0_10 = arith.constant 0 : index
    %14 = memref.load %arg6[%c0_10] : memref<1xf32, #tpu.memory_space<smem>>
    %15 = vector.broadcast %14 : f32 to vector<16x1xf32>
    %16 = arith.addf %13, %15 : vector<16x1xf32>
    %17 = tpu.iota {dimensions = array<i32: 0>} : vector<16x128xi32>
    %18 = vector.broadcast %0 : vector<1x128xi32> to vector<16x128xi32>
    %19 = arith.cmpi eq, %17, %18 : vector<16x128xi32>
    %cst_11 = arith.constant 0.000000e+00 : f32
    %20 = vector.shape_cast %16 : vector<16x1xf32> to vector<16x1xf32>
    %21 = vector.broadcast %20 : vector<16x1xf32> to vector<16x128xf32>
    %22 = vector.broadcast %cst_11 : f32 to vector<16x128xf32>
    %23 = arith.select %19, %21, %22 : vector<16x128xi1>, vector<16x128xf32>
    %cst_12 = arith.constant dense<0.000000e+00> : vector<128xf32>
    %24 = vector.multi_reduction <add>, %23, %cst_12 [0] : vector<16x128xf32> to vector<128xf32>
    %25 = vector.shape_cast %24 : vector<128xf32> to vector<1x128xf32>
    %c0_13 = arith.constant 0 : index
    %c0_14 = arith.constant 0 : index
    %26 = vector.load %arg7[%c0_13, %c0_14] : memref<1x128xf32, #tpu.memory_space<vmem>>, vector<1x128xf32>
    tpu.vector_store %arg7[%c0_13, %c0_14], %25 {strides = array<i32>} : memref<1x128xf32, #tpu.memory_space<vmem>>, vector<1x128xf32>,
    return
  }
  func.func @transform_0(%arg0: i32) -> (i32, i32) {
    %c0_i32 = arith.constant 0 : i32
    %c0_i32_0 = arith.constant 0 : i32
    return %c0_i32, %arg0 : i32, i32
  }
  func.func @transform_1(%arg0: i32) -> (i32, i32) {
    %c0_i32 = arith.constant 0 : i32
    %c0_i32_0 = arith.constant 0 : i32
    %c0_i32_1 = arith.constant 0 : i32
    return %c0_i32, %c0_i32_0 : i32, i32
  }
  func.func @transform_2(%arg0: i32) -> (i32, i32) {
    %c0_i32 = arith.constant 0 : i32
    %c0_i32_0 = arith.constant 0 : i32
    %c0_i32_1 = arith.constant 0 : i32
    return %c0_i32, %c0_i32_0 : i32, i32
  }
  func.func @transform_3(%arg0: i32) -> (i32, i32) {
    %c0_i32 = arith.constant 0 : i32
    %c0_i32_0 = arith.constant 0 : i32
    %c0_i32_1 = arith.constant 0 : i32
    return %c0_i32, %c0_i32_0 : i32, i32
  }
  func.func @transform_4(%arg0: i32) -> (i32, i32) {
    %c0_i32 = arith.constant 0 : i32
    %c0_i32_0 = arith.constant 0 : i32
    %c0_i32_1 = arith.constant 0 : i32
    return %c0_i32, %c0_i32_0 : i32, i32
  }
  func.func @transform_5(%arg0: i32) -> i32 {
    %c0_i32 = arith.constant 0 : i32
    %c0_i32_0 = arith.constant 0 : i32
    return %c0_i32 : i32
  }
  func.func @transform_6(%arg0: i32) -> (i32, i32) {
    %c0_i32 = arith.constant 0 : i32
    %c0_i32_0 = arith.constant 0 : i32
    return %c0_i32, %arg0 : i32, i32
  }
}

</mosaic_0001>

<bundles_post_ra>
// kernel: tpu_custom_call.1
= control target key start
LH: loop header
LB: loop body
LE: loop exit
PB: predicated region body
PF: predicated region fallthrough
CT: control target
= control target key end

     0   :  { %12 = vsyncpa [#allocation4], 0  ;;  %s438_s0 = inlined_call_operand.vmem [shape: s32[1,128], index: 0, kind: input, shape index: {}]   ;;  %s439_s1 = inlined_call_operand.hbm [shape: f32[16,64], index: 1, kind: input, shape index: {}]   ;;  %s440_s2 = inlined_call_operand.hbm [shape: f32[64,64], index: 2, kind: input, shape index: {}]   ;;  %s441_s3 = inlined_call_operand.vmem [shape: f32[1,64], index: 3, kind: input, shape index: {}]   ;;  %s442_s4 = inlined_call_operand.vmem [shape: f32[1,64], index: 4, kind: input, shape index: {}]   ;;  %s443_s5 = inlined_call_operand.<no memory space> [shape: f32[1], index: 5, kind: input, shape index: {}]   ;;  %s444_s6 = inlined_call_operand.hbm [shape: f32[1,128], index: 6, kind: output, shape index: {}]  }
   0x1   :  { %13 = vsyncpa [#allocation7], 0 }
   0x2   :  { %14 = vsyncpa [#allocation5], 0  ;;  %s346_s21 = smov [#allocation3]   ;;  %s274_s25 = scalar_lea.hbm %s439_s1, 256 }
   0x3   :  { %s22_s22 = sshll.u32 %s346_s21, 4  ;;  %p275_p0 = scmp.ne.s32.totalorder %s439_s1, %s274_s25  ;;  %s23_s22 = int_to_ptr.vmem [resolvable:$true] %s22_s22 }
   0x4   :  { %p278_p1 = scmp.lt.u32.totalorder %s274_s25, %s439_s1 }
   0x6   :  { %p280_p2 = pnand %p278_p1, %p275_p0 }
   0x8   :  { %283 = shalt.err (!%p280_p2)
}
   0x9   :  { %s284_s30 = scalar_lea.vmem %s23_s22, 256  ;;  %p289_p4 = scmp.lt.s32.totalorder %s23_s22, %s23_s22 }
   0xa   :  { %p285_p3 = scmp.ne.s32.totalorder %s23_s22, %s284_s30  ;;  %p290_p5 = scmp.lt.s32.totalorder %s284_s30, %s284_s30 }
   0xc   :  { %p291_p6 = por %p290_p5, %p289_p4 }
   0xe   :  { %p292_p7 = pnand %p291_p6, %p285_p3 }
  0x10   :  { %295 = shalt.err (!%p292_p7)
}
  0x11   :  { %s347_s7 = smov 128   ;;  %s348_s8 = smov 8  }
  0x12   :  { %28 = dma.hbm_to_vmem [thread:$0]  %s439_s1, 256, %s23_s22, [#allocation4], %s347_s7, %s347_s7, %s348_s8  }
  0x13   :  { %s349_s11 = smov [#allocation6]   ;;  %s296_s15 = scalar_lea.hbm %s440_s2, 1024 }
  0x14   :  { %s34_s12 = sshll.u32 %s349_s11, 4  ;;  %p297_p8 = scmp.ne.s32.totalorder %s440_s2, %s296_s15  ;;  %s35_s12 = int_to_ptr.vmem [resolvable:$true] %s34_s12 }
  0x15   :  { %p300_p9 = scmp.lt.u32.totalorder %s296_s15, %s440_s2 }
  0x17   :  { %p302_p10 = pnand %p300_p9, %p297_p8 }
  0x19   :  { %305 = shalt.err (!%p302_p10)
}
  0x1a   :  { %s306_s20 = scalar_lea.vmem %s35_s12, 1024  ;;  %p311_p12 = scmp.lt.s32.totalorder %s35_s12, %s35_s12 }
  0x1b   :  { %p307_p11 = scmp.ne.s32.totalorder %s35_s12, %s306_s20  ;;  %p312_p13 = scmp.lt.s32.totalorder %s306_s20, %s306_s20 }
  0x1d   :  { %p313_p0 = por %p312_p13, %p311_p12 }
  0x1f   :  { %p314_p1 = pnand %p313_p0, %p307_p11 }
  0x21   :  { %317 = shalt.err (!%p314_p1)
}
  0x22   :  { %40 = dma.hbm_to_vmem [thread:$0]  %s440_s2, 1024, %s35_s12, [#allocation7], %s347_s7, %s347_s7, %s348_s8  }
  0x23   :  { %340 = dma.done.wait [#allocation4], 256  }
  0x24   :  { %341 = vsyncadd [#allocation4], 4294967040 }
  0x25   :  { %342 = dma.done.wait [#allocation7], 1024  }
  0x26   :  { %343 = vsyncadd [#allocation7], 4294966272  ;;  %v58_v0 = vld [vmem:[#allocation6] sm:$0xff]  ;;  %v59_v1 = vld [vmem:[#allocation6 + $0x8] sm:$0xff]  ;;  %vm73_vm0 = vcmask 523264   ;;  %v176_v28 = vlaneseq  ;;  %v173_v30 = vstv %s443_s5  ;;  %s350_s27 = smov [#allocation8]  }
  0x27   :  { %v60_v2 = vld [vmem:[#allocation6 + $0x10] sm:$0xff]  ;;  %v245_v3 = vpack.c.bf16 %v59_v1, %v58_v0  ;;  %v61_v4 = vld [vmem:[#allocation6 + $0x18] sm:$0xff]  ;;  %v62_v6 = vld [vmem:[#allocation6 + $0x20] sm:$0xff]  ;;  %s201_s5 = sshll.u32 %s350_s27, 4  ;;  %s202_s5 = int_to_ptr.vmem [resolvable:$true] %s201_s5 }
  0x28   :  { %v249_v5 = vpack.c.bf16 %v61_v4, %v60_v2  ;;  %v63_v7 = vld [vmem:[#allocation6 + $0x28] sm:$0xff]  ;;  %v54_v8 = vld [vmem:[#allocation3] sm:$0xff]  ;;  %v55_v9 = vld [vmem:[#allocation3 + $0x8] sm:$0xff]  ;;  %v177_v29 = vshrl.u32 %v176_v28, 7  ;;  %s318_s28 = scalar_lea.vmem %s202_s5, 16  ;;  %p323_p3 = scmp.lt.s32.totalorder %s202_s5, %s202_s5 }
  0x29   :  { %246 = vmatprep.subr.bf16.mxu0 %v245_v3  ;;  %266 = vtanh.f32 %v54_v8  ;;  %v253_v10 = vpack.c.bf16 %v63_v7, %v62_v6  ;;  %v64_v11 = vld [vmem:[#allocation6 + $0x30] sm:$0xff]  ;;  %v65_v12 = vld [vmem:[#allocation6 + $0x38] sm:$0xff]  ;;  %p319_p2 = scmp.ne.s32.totalorder %s202_s5, %s318_s28 }
  0x2a   :  { %248 = vmatpush3.bf16.msra.mxu0 %v245_v3  ;;  %268 = vtanh.f32 %v55_v9  ;;  %v257_v13 = vpack.c.bf16 %v65_v12, %v64_v11  ;;  %v211_v16 = vld [vmem:[%s441_s3] ss:$0 sm:$0xff]  ;;  %v178_v32 = vadd.s32 8, %v177_v29 }
  0x2b   :  { %250 = vmatprep.subr.bf16.mxu0 %v249_v5  ;;  %v214_v21 = vld [vmem:[%s442_s4] ss:$0 sm:$0xff] }
  0x2c   :  { %v215_v33 = vld [vmem:[%s438_s0] ss:$0 sm:$0xff]  ;;  %s322_s0 = scalar_lea.vmem %s202_s5, 32 }
  0x2d   :  { %vm183_vm1 = vcmp.eq.s32.totalorder %v177_v29, %v215_v33  ;;  %vm184_vm2 = vcmp.eq.s32.totalorder %v178_v32, %v215_v33  ;;  %p324_p4 = scmp.lt.s32.totalorder %s322_s0, %s318_s28 }
  0x2e   :  { %252 = vmatpush3.bf16.msra.mxu0 %v249_v5 }
  0x2f   :  { %254 = vmatprep.subr.bf16.mxu0 %v253_v10  ;;  %p325_p5 = por %p324_p4, %p323_p3 }
  0x31   :  { %p326_p6 = pnand %p325_p5, %p319_p2 }
  0x32   :  { %256 = vmatpush3.bf16.msra.mxu0 %v253_v10 }
  0x33   :  { %v267_v14 = vpop.eup %266  ;;  %258 = vmatprep.subr.bf16.mxu0 %v257_v13 }
  0x34   :  { %242 = vmatprep.mubr.msk.f32.mxu0 %vm73_vm0, %v267_v14  ;;  %v269_v15 = vpop.eup %268 }
  0x36   :  { %260 = vmatpush3.bf16.msra.mxu0 %v257_v13 }
  0x39   :  { %243 = vmatmul.mubr.msk.f32.vlgmr.msra.gmra.mrb[0].mxu0 %vm73_vm0, %v269_v15 }
 0x10c   :  { %v244_v17 = vpop.f32.mrb[0].mxu0 }
 0x10d   :  { %v152_v18 = vadd.f32 %v244_v17, %v211_v16  ;;  %v146_v19 = vpop.f32.mrb[1].mxu0 }
 0x10e   :  { %v147_v20 = vadd.f32 %v211_v16, %v146_v19 }
 0x10f   :  { %270 = vtanh.f32 %v152_v18 }
 0x110   :  { %272 = vtanh.f32 %v147_v20 }
 0x119   :  { %v271_v22 = vpop.eup %270 }
 0x11a   :  { %v273_v23 = vpop.eup %272  ;;  %v165_v26 = vmul.f32 %v271_v22, %v214_v21 }
 0x11b   :  { %v164_v24 = vmul.f32 %v273_v23, %v214_v21 }
 0x11c   :  { %v169_v27 = vsel %vm73_vm0, %v165_v26, 0.0 }
 0x11d   :  { %v166_v25 = vsel %vm73_vm0, %v164_v24, 0.0 }
 0x11e   :  { %167 = vadd.xlane.f32.xlu0 %v166_v25 }
 0x122   :  { %170 = vadd.xlane.f32.xlu0 %v169_v27 }
 0x1ab   :  { %v168_v31 = vpop.xlane.xlu0 %167 }
 0x1ac   :  { %v174_v34 = vadd.f32 %v173_v30, %v168_v31 }
 0x1ae   :  { %v185_v37 = vsel %vm183_vm1, %v174_v34, 0.0 }
 0x1af   :  { %v171_v35 = vpop.xlane.xlu0 %170 }
 0x1b0   :  { %v175_v36 = vadd.f32 %v173_v30, %v171_v35 }
 0x1b2   :  { %v186_v38 = vsel %vm184_vm2, %v175_v36, 0.0 }
 0x1b3   :  { %v187_v39 = vadd.f32 %v186_v38, %v185_v37 }
 0x1b5   :  { %v188_v40 = vrot.slane %v187_v39, 4 }
 0x1b7   :  { %v189_v41 = vadd.f32 %v188_v40, %v187_v39 }
 0x1b9   :  { %v190_v42 = vrot.slane %v189_v41, 2 }
 0x1bb   :  { %v191_v43 = vadd.f32 %v190_v42, %v189_v41 }
 0x1bd   :  { %v192_v44 = vrot.slane %v191_v43, 1 }
 0x1bf   :  { %v193_v45 = vadd.f32 %v192_v44, %v191_v43 }
 0x1c1   :  { %194 = vst [vmem:[#allocation8] sm:$0x1] %v193_v45 }
 0x1c2   :  { %329 = shalt.err (!%p326_p6)
}
 0x1c3   :  { %s330_s7 = scalar_lea.hbm %s444_s6, 16 }
 0x1c4   :  { %p331_p7 = scmp.ne.s32.totalorder %s444_s6, %s330_s7  ;;  %p334_p8 = scmp.lt.u32.totalorder %s330_s7, %s444_s6 }
 0x1c6   :  { %p336_p9 = pnand %p334_p8, %p331_p7 }
 0x1c8   :  { %339 = shalt.err (!%p336_p9)
}
 0x1c9   :  { %204 = dma.vmem_to_hbm [thread:$0]  %s202_s5, 16, %s444_s6, [#allocation5]  }
 0x1ca   :  { %344 = dma.done.wait [#allocation5], 16  }
 0x1cb   :  { %345 = vsyncadd [#allocation5], 4294967280 }
 0x1cc   :  { %208 = vsyncpa [#allocation4], 1 }
 0x1cd   :  { %209 = vsyncpa [#allocation7], 1 }
 0x1ce   :  { %210 = vsyncpa [#allocation5], 1 }

</bundles_post_ra>
